<compile_context>
chip_gen: v6e
topology: v6e:2x2x1
jax: 0.10.0
libtpu: 0.0.40
codegen_flags: <defaults>
</compile_context>

<pallas_src>
import functools

import jax
import jax.numpy as jnp
from jax.experimental import pallas as pl
from jax.experimental.pallas import tpu as pltpu

_MIB = 1024 * 1024


# --------------------------------------------------------------------------------------
# Kernel
# --------------------------------------------------------------------------------------
def baseline_kernel(x_ref, inv_len_ref, w1_ref, b1_ref, w2_ref, b2_ref, w3_ref, b3_ref,
                    out_ref, acc_ref, *, seq_chunk, fold):
    """grid = (batch_tiles, seq_tiles); seq axis is the reduction ('arbitrary') axis."""
    j = pl.program_id(1)

    # ---- init accumulator at the first sequence tile ----
    @pl.when(j == 0)
    def _():
        acc_ref[...] = jnp.zeros_like(acc_ref)

    bt, nt, lanes = x_ref.shape
    n_full = nt // seq_chunk
    rem = nt - n_full * seq_chunk

    # ---- streaming phase: same-layout VALU adds into [bt, seq_chunk, lanes] f32 scratch.
    # The cross-sublane reduce is deferred to the finalize branch (once per batch tile).
    if n_full == 1:
        acc_ref[...] += x_ref[:, pl.ds(0, seq_chunk), :].astype(jnp.float32)
    elif n_full > 1:
        def body(c, carry):
            start = pl.multiple_of(c * seq_chunk, seq_chunk)
            acc_ref[...] += x_ref[:, pl.ds(start, seq_chunk), :].astype(jnp.float32)
            return carry
        jax.lax.fori_loop(0, n_full, body, 0, unroll=(n_full <= 8))
    if rem > 0:  # static tail chunk
        tail = x_ref[:, pl.ds(n_full * seq_chunk, rem), :].astype(jnp.float32)
        acc_ref[:, :rem, :] += tail

    # ---- finalize: mean, MLP head, single store (output block is resident across j) ----
    @pl.when(j == pl.num_programs(1) - 1)
    def _():
        summed = jnp.sum(acc_ref[...], axis=1)            # one sublane reduce per batch tile
        if fold > 1:                                      # undo lane fold: lanes = fold * E
            e = lanes // fold
            acc = summed[:, :e]
            for k in range(1, fold):
                acc = acc + summed[:, k * e:(k + 1) * e]
            summed = acc
        # MeanPoolingLayer: sum over N, multiply by precomputed 1/length.
        mean = summed * inv_len_ref[...]                  # [bt, E]

        h = jnp.dot(mean, w1_ref[...], preferred_element_type=jnp.float32) + b1_ref[...]
        h = jnp.maximum(h, 0.0)
        # TODO(synk): Dropout(p=0.5) is identity in eval mode; training-mode mask not implemented.
        h = jnp.dot(h, w2_ref[...], preferred_element_type=jnp.float32) + b2_ref[...]
        h = jnp.maximum(h, 0.0)
        out_ref[...] = (jnp.dot(h, w3_ref[...], preferred_element_type=jnp.float32)
                        + b3_ref[...]).astype(out_ref.dtype)


# --------------------------------------------------------------------------------------
# Wrapper
# --------------------------------------------------------------------------------------
def _round_up(x, m):
    return ((x + m - 1) // m) * m


def _cdiv(a, b):
    return -(-a // b)


def _vmem_capacity_bytes():
    """Physical VMEM: get_tpu_info() with a device_kind fallback (never silently halve
    the budget on 128 MiB parts)."""
    try:
        cap = int(pltpu.get_tpu_info().vmem_capacity_bytes)
        if cap > 0:
            return cap
    except Exception:
        pass
    try:
        kind = jax.devices()[0].device_kind.lower()
    except Exception:
        kind = ""
    if "v7" in kind:
        return 64 * _MIB
    if "v5" in kind or "v6" in kind:
        return 128 * _MIB
    return 64 * _MIB  # conservative default


def baseline_model_forward(batch_texts, batch_text_lengths, params):
    """batch_texts: [B, N, E] (any float dtype already resident in HBM),
    batch_text_lengths: [B], params: dict of [in, out] weights / [1, out] biases."""
    x = batch_texts
    B, N, E = x.shape
    itemsize = jnp.dtype(x.dtype).itemsize

    w1, b1 = params["w1"], params["b1"]      # [E, H1], [1, H1]
    w2, b2 = params["w2"], params["b2"]      # [H1, H2], [1, H2]
    w3, b3 = params["w3"], params["b3"]      # [H2, O], [1, O]
    H1, H2, O = w1.shape[1], w2.shape[1], w3.shape[1]

    # Lane-dense output (unmasked vst); extra zero columns are sliced off below.
    O_pad = _round_up(O, 128)
    if O_pad != O:
        w3 = jnp.pad(w3, ((0, 0), (0, O_pad - O)))
        b3 = jnp.pad(b3, ((0, 0), (0, O_pad - O)))

    # ---- lane fold: pack g sequence positions into the lane axis when E is small -----
    fold = 128 // E if (E < 128 and 128 % E == 0) else 1
    lanes = fold * E

    # ---- batch tiling -----------------------------------------------------------------
    max_bt = 128                              # smaller Bt -> longer per-row DMAs + small acc
    n_btiles = max(1, _cdiv(B, max_bt))
    if B >= 16:
        n_btiles = max(n_btiles, 2)           # keep v7x's second TensorCore busy
    Bt = _round_up(_cdiv(B, n_btiles), 8)     # minimal padding
    B_pad = n_btiles * Bt

    # ---- VMEM budget / sequence tiling -------------------------------------------------
    weights_bytes = sum(int(a.size) * jnp.dtype(a.dtype).itemsize
                        for a in (w1, b1, w2, b2, w3, b3))
    cap = _vmem_capacity_bytes()
    vmem_limit = min(cap - 8 * _MIB, int(cap * 0.85))

    sub = 16 if itemsize == 2 else 8          # sublane granule of the (folded) seq dim
    # Reserve: weights (constant index_maps -> DMA'd once, but default pipelining keeps
    # 2 buffers), out / inv_len double buffers, chunk accumulator, plus slack.
    # TODO(synk): pipeline_mode=pl.Buffered(1) on the weight specs would reclaim one weight
    # copy on VMEM-tight parts; left as a sweep for portability.
    reserve = (2 * weights_bytes
               + 2 * Bt * O_pad * 4 + 2 * Bt * 128 * 4
               + 512 * 1024 + 2 * _MIB)
    stream_budget = max(vmem_limit - reserve, 2 * Bt * sub * lanes * itemsize)
    per_buf = stream_budget // 2              # exactly one /2 for the two x pipeline buffers

    N_g = _round_up(N, fold)
    N2 = N_g // fold                          # folded sequence length
    row_bytes = Bt * lanes * itemsize         # bytes per folded seq position in one tile
    max_nt = max(per_buf // row_bytes, 1)
    if max_nt >= N2:
        Nt = N2
        N2_pad = N2
    else:
        Nt = max((max_nt // sub) * sub, sub)
        N2_pad = _round_up(N2, Nt)

    # In-kernel chunk: ~128 KiB of streamed input per step (multiple of the sublane granule).
    chunk_rows = max((128 * 1024 // max(row_bytes, 1)) // sub * sub, sub)
    seq_chunk = min(chunk_rows, Nt)

    # ---- pad & fold (zero padding is exact for a sum reduction) ------------------------
    pad_b = B_pad - B
    pad_n = N2_pad * fold - N
    if pad_b or pad_n:
        x = jnp.pad(x, ((0, pad_b), (0, pad_n), (0, 0)))
    if fold > 1:
        x = x.reshape(B_pad, N2_pad, lanes)

    # MeanPoolingLayer divides by the true length; precompute the reciprocal once.
    # NOTE: length == 0 yields inf/NaN logits, matching the PyTorch divide.
    # NOTE: padded sequence positions are assumed zero (same assumption as the reference).
    lengths = batch_text_lengths.astype(jnp.float32).reshape(-1, 1)   # .view(-1, 1)
    inv_len = 1.0 / lengths
    if pad_b:
        inv_len = jnp.pad(inv_len, ((0, pad_b), (0, 0)), constant_values=1.0)

    grid = (B_pad // Bt, N2_pad // Nt)

    cost = pl.CostEstimate(
        flops=int(2 * B_pad * (E * H1 + H1 * H2 + H2 * O_pad) + B_pad * N2_pad * lanes),
        transcendentals=0,
        bytes_accessed=int(B_pad * N2_pad * lanes * itemsize + weights_bytes
                           + B_pad * (O_pad + 1) * 4),
    )

    kernel = functools.partial(baseline_kernel, seq_chunk=seq_chunk, fold=fold)

    out = pl.pallas_call(
        kernel,
        out_shape=jax.ShapeDtypeStruct((B_pad, O_pad), jnp.float32),
        grid_spec=pltpu.PrefetchScalarGridSpec(
            num_scalar_prefetch=0,
            grid=grid,
            in_specs=[
                pl.BlockSpec((Bt, Nt, lanes), lambda i, j: (i, j, 0)),  # streamed activations
                pl.BlockSpec((Bt, 1), lambda i, j: (i, 0)),             # 1 / length
                pl.BlockSpec(w1.shape, lambda i, j: (0, 0)),            # resident weights
                pl.BlockSpec(b1.shape, lambda i, j: (0, 0)),
                pl.BlockSpec(w2.shape, lambda i, j: (0, 0)),
                pl.BlockSpec(b2.shape, lambda i, j: (0, 0)),
                pl.BlockSpec(w3.shape, lambda i, j: (0, 0)),
                pl.BlockSpec(b3.shape, lambda i, j: (0, 0)),
            ],
            out_specs=pl.BlockSpec((Bt, O_pad), lambda i, j: (i, 0)),
            scratch_shapes=[pltpu.VMEM((Bt, seq_chunk, lanes), jnp.float32)],
        ),
        compiler_params=pltpu.CompilerParams(
            dimension_semantics=("parallel", "arbitrary"),
            vmem_limit_bytes=int(vmem_limit),
        ),
        cost_estimate=cost,
    )(x, inv_len, w1, b1, w2, b2, w3, b3)

    return out[:B, :O]


# --------------------------------------------------------------------------------------
# Params / reference
# --------------------------------------------------------------------------------------
def init_params(key, embedding_dim, fc1_width, fc2_width, output_dim):
    """nn.Linear-style uniform(-1/sqrt(fan_in), 1/sqrt(fan_in)); weights stored [in, out]."""
    ks = jax.random.split(key, 6)

    def linear(kw, kb, fan_in, fan_out):
        bound = 1.0 / jnp.sqrt(jnp.float32(fan_in))
        w = jax.random.uniform(kw, (fan_in, fan_out), jnp.float32, -bound, bound)
        b = jax.random.uniform(kb, (1, fan_out), jnp.float32, -bound, bound)
        return w, b

    w1, b1 = linear(ks[0], ks[1], embedding_dim, fc1_width)
    w2, b2 = linear(ks[2], ks[3], fc1_width, fc2_width)
    w3, b3 = linear(ks[4], ks[5], fc2_width, output_dim)
    return {"w1": w1, "b1": b1, "w2": w2, "b2": b2, "w3": w3, "b3": b3}


def baseline_model_ref(batch_texts, batch_text_lengths, params):
    """Pure-JAX reference (matches the PyTorch forward in eval mode)."""
    lengths = batch_text_lengths.astype(jnp.float32).reshape(-1, 1)
    x = jnp.sum(batch_texts.astype(jnp.float32), axis=1) / lengths
    x = jnp.maximum(x @ params["w1"] + params["b1"], 0.0)
    x = jnp.maximum(x @ params["w2"] + params["b2"], 0.0)
    return x @ params["w3"] + params["b3"]


# --------------------------------------------------------------------------------------
# Test
# --------------------------------------------------------------------------------------
if __name__ == "__main__":
    key = jax.random.PRNGKey(0)
    k_x, k_p = jax.random.split(key)

    # small shapes: batch=2, seq=8, embedding=32, fc1=64, fc2=32, output=4
    B, N, E = 2, 8, 32
    FC1, FC2, OUT = 64, 32, 4

    batch_texts = jax.random.normal(k_x, (B, N, E), jnp.float32)
    batch_text_lengths = jnp.array([8, 5], dtype=jnp.int32)   # original seq lengths
    params = init_params(k_p, E, FC1, FC2, OUT)

    # float32 streaming path
    out = baseline_model_forward(batch_texts, batch_text_lengths, params)
    out = jax.block_until_ready(out)
    ref = baseline_model_ref(batch_texts, batch_text_lengths, params)
    assert out.shape == (B, OUT)
    # tolerance accounts for MXU default (reduced-precision-pass) f32 matmuls
    assert jnp.allclose(out, ref, atol=1e-2, rtol=1e-2), "f32 mismatch vs reference"

    # bf16 activations already resident in HBM (no wrapper-side cast): halves streamed bytes,
    # accumulation / MLP head stay f32.
    bt_bf16 = batch_texts.astype(jnp.bfloat16)
    out_bf16 = baseline_model_forward(bt_bf16, batch_text_lengths, params)
    out_bf16 = jax.block_until_ready(out_bf16)
    ref_bf16 = baseline_model_ref(bt_bf16, batch_text_lengths, params)
    assert jnp.allclose(out_bf16, ref_bf16, atol=2e-2, rtol=2e-2), "bf16 mismatch"

    print("KERNEL_OK")
</pallas_src>

<mosaic_0001>
module attributes {stable_mosaic.version = 11 : i64} {
  func.func @baseline_kernel(%arg0: i32, %arg1: i32, %arg2: memref<8x2x128xf32, #tpu.memory_space<vmem>>, %arg3: memref<8x1xf32, #tpu.memory_space<vmem>>, %arg4: memref<32x64xf32, #tpu.memory_space<vmem>>, %arg5: memref<1x64xf32, #tpu.memory_space<vmem>>, %arg6: memref<64x32xf32, #tpu.memory_space<vmem>>, %arg7: memref<1x32xf32, #tpu.memory_space<vmem>>, %arg8: memref<32x128xf32, #tpu.memory_space<vmem>>, %arg9: memref<1x128xf32, #tpu.memory_space<vmem>>, %arg10: memref<8x128xf32, #tpu.memory_space<vmem>>, %arg11: memref<8x2x128xf32, #tpu.memory_space<vmem>>) attributes {dimension_semantics = [#tpu.dimension_semantics<parallel>, #tpu.dimension_semantics<arbitrary>], iteration_bounds = array<i64: 1, 1>, scalar_prefetch = 0 : i64, scratch_operands = 1 : i64, tpu.core_type = #tpu.core_type<tc>, window_params = [{transform_indices = @transform_0, window_bounds = array<i64: 8, 2, 128>}, {transform_indices = @transform_1, window_bounds = array<i64: 8, 1>}, {pipeline_mode = #tpu.pipeline_mode<synchronous>, transform_indices = @transform_2, window_bounds = array<i64: 32, 64>}, {pipeline_mode = #tpu.pipeline_mode<synchronous>, transform_indices = @transform_3, window_bounds = array<i64: 1, 64>}, {pipeline_mode = #tpu.pipeline_mode<synchronous>, transform_indices = @transform_4, window_bounds = array<i64: 64, 32>}, {pipeline_mode = #tpu.pipeline_mode<synchronous>, transform_indices = @transform_5, window_bounds = array<i64: 1, 32>}, {pipeline_mode = #tpu.pipeline_mode<synchronous>, transform_indices = @transform_6, window_bounds = array<i64: 32, 128>}, {pipeline_mode = #tpu.pipeline_mode<synchronous>, transform_indices = @transform_7, window_bounds = array<i64: 1, 128>}, {transform_indices = @transform_8, window_bounds = array<i64: 8, 128>}]} {
    %c0_i32 = arith.constant 0 : i32
    %0 = arith.cmpi eq, %arg1, %c0_i32 : i32
    %1 = arith.extui %0 : i1 to i32
    %c0_i32_0 = arith.constant 0 : i32
    %2 = arith.cmpi ne, %1, %c0_i32_0 : i32
    scf.if %2 {
      %cst = arith.constant 0.000000e+00 : f32
      %10 = vector.broadcast %cst : f32 to vector<8x2x128xf32>
      %c0_11 = arith.constant 0 : index
      %c0_12 = arith.constant 0 : index
      %c0_13 = arith.constant 0 : index
      %11 = vector.load %arg11[%c0_11, %c0_12, %c0_13] : memref<8x2x128xf32, #tpu.memory_space<vmem>>, vector<8x2x128xf32>
      tpu.vector_store %arg11[%c0_11, %c0_12, %c0_13], %10 {strides = array<i32>} : memref<8x2x128xf32, #tpu.memory_space<vmem>>, vector<8x2x128xf32>,
    } else {
    }
    %c0 = arith.constant 0 : index
    %c0_1 = arith.constant 0 : index
    %c0_2 = arith.constant 0 : index
    %3 = vector.load %arg11[%c0, %c0_1, %c0_2] : memref<8x2x128xf32, #tpu.memory_space<vmem>>, vector<8x2x128xf32>
    %c0_3 = arith.constant 0 : index
    %c0_4 = arith.constant 0 : index
    %c0_5 = arith.constant 0 : index
    %4 = vector.load %arg2[%c0_3, %c0_4, %c0_5] : memref<8x2x128xf32, #tpu.memory_space<vmem>>, vector<8x2x128xf32>
    %5 = arith.addf %3, %4 : vector<8x2x128xf32>
    %c0_6 = arith.constant 0 : index
    %c0_7 = arith.constant 0 : index
    %c0_8 = arith.constant 0 : index
    %6 = vector.load %arg11[%c0_6, %c0_7, %c0_8] : memref<8x2x128xf32, #tpu.memory_space<vmem>>, vector<8x2x128xf32>
    tpu.vector_store %arg11[%c0_6, %c0_7, %c0_8], %5 {strides = array<i32>} : memref<8x2x128xf32, #tpu.memory_space<vmem>>, vector<8x2x128xf32>,
    %c0_i32_9 = arith.constant 0 : i32
    %7 = arith.cmpi eq, %arg1, %c0_i32_9 : i32
    %8 = arith.extui %7 : i1 to i32
    %c0_i32_10 = arith.constant 0 : i32
    %9 = arith.cmpi ne, %8, %c0_i32_10 : i32
    scf.if %9 {
      %c0_11 = arith.constant 0 : index
      %c0_12 = arith.constant 0 : index
      %c0_13 = arith.constant 0 : index
      %10 = vector.load %arg11[%c0_11, %c0_12, %c0_13] : memref<8x2x128xf32, #tpu.memory_space<vmem>>, vector<8x2x128xf32>
      %cst = arith.constant dense<0.000000e+00> : vector<8x128xf32>
      %11 = vector.multi_reduction <add>, %10, %cst [1] : vector<8x2x128xf32> to vector<8x128xf32>
      %12 = vector.extract_strided_slice %11 {offsets = [0, 0], sizes = [8, 32], strides = [1, 1]} : vector<8x128xf32> to vector<8x32xf32>
      %13 = vector.extract_strided_slice %11 {offsets = [0, 32], sizes = [8, 32], strides = [1, 1]} : vector<8x128xf32> to vector<8x32xf32>
      %14 = arith.addf %12, %13 : vector<8x32xf32>
      %15 = vector.extract_strided_slice %11 {offsets = [0, 64], sizes = [8, 32], strides = [1, 1]} : vector<8x128xf32> to vector<8x32xf32>
      %16 = arith.addf %14, %15 : vector<8x32xf32>
      %17 = vector.extract_strided_slice %11 {offsets = [0, 96], sizes = [8, 32], strides = [1, 1]} : vector<8x128xf32> to vector<8x32xf32>
      %18 = arith.addf %16, %17 : vector<8x32xf32>
      %c0_14 = arith.constant 0 : index
      %c0_15 = arith.constant 0 : index
      %19 = vector.load %arg3[%c0_14, %c0_15] : memref<8x1xf32, #tpu.memory_space<vmem>>, vector<8x1xf32>
      %20 = vector.broadcast %19 : vector<8x1xf32> to vector<8x32xf32>
      %21 = arith.mulf %18, %20 : vector<8x32xf32>
      %c0_16 = arith.constant 0 : index
      %c0_17 = arith.constant 0 : index
      %22 = vector.load %arg4[%c0_16, %c0_17] : memref<32x64xf32, #tpu.memory_space<vmem>>, vector<32x64xf32>
      %cst_18 = arith.constant dense<0.000000e+00> : vector<8x64xf32>
      %23 = tpu.matmul %21, %22, %cst_18 {dimension_numbers = #tpu.dot_dimension_numbers<[1], [0], [0], [1], [0, 0, 1, 1], [], []>} : vector<8x32xf32>, vector<32x64xf32>, vector<8x64xf32> -> vector<8x64xf32>
      %c0_19 = arith.constant 0 : index
      %c0_20 = arith.constant 0 : index
      %24 = vector.load %arg5[%c0_19, %c0_20] : memref<1x64xf32, #tpu.memory_space<vmem>>, vector<1x64xf32>
      %25 = vector.broadcast %24 : vector<1x64xf32> to vector<8x64xf32>
      %26 = arith.addf %23, %25 : vector<8x64xf32>
      %cst_21 = arith.constant 0.000000e+00 : f32
      %27 = vector.broadcast %cst_21 : f32 to vector<8x64xf32>
      %28 = arith.maximumf %26, %27 : vector<8x64xf32>
      %c0_22 = arith.constant 0 : index
      %c0_23 = arith.constant 0 : index
      %29 = vector.load %arg6[%c0_22, %c0_23] : memref<64x32xf32, #tpu.memory_space<vmem>>, vector<64x32xf32>
      %cst_24 = arith.constant dense<0.000000e+00> : vector<8x32xf32>
      %30 = tpu.matmul %28, %29, %cst_24 {dimension_numbers = #tpu.dot_dimension_numbers<[1], [0], [0], [1], [0, 0, 1, 1], [], []>} : vector<8x64xf32>, vector<64x32xf32>, vector<8x32xf32> -> vector<8x32xf32>
      %c0_25 = arith.constant 0 : index
      %c0_26 = arith.constant 0 : index
      %31 = vector.load %arg7[%c0_25, %c0_26] : memref<1x32xf32, #tpu.memory_space<vmem>>, vector<1x32xf32>
      %32 = vector.broadcast %31 : vector<1x32xf32> to vector<8x32xf32>
      %33 = arith.addf %30, %32 : vector<8x32xf32>
      %cst_27 = arith.constant 0.000000e+00 : f32
      %34 = vector.broadcast %cst_27 : f32 to vector<8x32xf32>
      %35 = arith.maximumf %33, %34 : vector<8x32xf32>
      %c0_28 = arith.constant 0 : index
      %c0_29 = arith.constant 0 : index
      %36 = vector.load %arg8[%c0_28, %c0_29] : memref<32x128xf32, #tpu.memory_space<vmem>>, vector<32x128xf32>
      %cst_30 = arith.constant dense<0.000000e+00> : vector<8x128xf32>
      %37 = tpu.matmul %35, %36, %cst_30 {dimension_numbers = #tpu.dot_dimension_numbers<[1], [0], [0], [1], [0, 0, 1, 1], [], []>} : vector<8x32xf32>, vector<32x128xf32>, vector<8x128xf32> -> vector<8x128xf32>
      %c0_31 = arith.constant 0 : index
      %c0_32 = arith.constant 0 : index
      %38 = vector.load %arg9[%c0_31, %c0_32] : memref<1x128xf32, #tpu.memory_space<vmem>>, vector<1x128xf32>
      %39 = vector.broadcast %38 : vector<1x128xf32> to vector<8x128xf32>
      %40 = arith.addf %37, %39 : vector<8x128xf32>
      %c0_33 = arith.constant 0 : index
      %c0_34 = arith.constant 0 : index
      %41 = vector.load %arg10[%c0_33, %c0_34] : memref<8x128xf32, #tpu.memory_space<vmem>>, vector<8x128xf32>
      tpu.vector_store %arg10[%c0_33, %c0_34], %40 {strides = array<i32>} : memref<8x128xf32, #tpu.memory_space<vmem>>, vector<8x128xf32>,
    } else {
    }
    return
  }
  func.func @transform_0(%arg0: i32, %arg1: i32) -> (i32, i32, i32) {
    %c0_i32 = arith.constant 0 : i32
    %c0_i32_0 = arith.constant 0 : i32
    return %arg0, %arg1, %c0_i32 : i32, i32, i32
  }
  func.func @transform_1(%arg0: i32, %arg1: i32) -> (i32, i32) {
    %c0_i32 = arith.constant 0 : i32
    %c0_i32_0 = arith.constant 0 : i32
    return %arg0, %c0_i32 : i32, i32
  }
  func.func @transform_2(%arg0: i32, %arg1: i32) -> (i32, i32) {
    %c0_i32 = arith.constant 0 : i32
    %c0_i32_0 = arith.constant 0 : i32
    %c0_i32_1 = arith.constant 0 : i32
    return %c0_i32, %c0_i32_0 : i32, i32
  }
  func.func @transform_3(%arg0: i32, %arg1: i32) -> (i32, i32) {
    %c0_i32 = arith.constant 0 : i32
    %c0_i32_0 = arith.constant 0 : i32
    %c0_i32_1 = arith.constant 0 : i32
    return %c0_i32, %c0_i32_0 : i32, i32
  }
  func.func @transform_4(%arg0: i32, %arg1: i32) -> (i32, i32) {
    %c0_i32 = arith.constant 0 : i32
    %c0_i32_0 = arith.constant 0 : i32
    %c0_i32_1 = arith.constant 0 : i32
    return %c0_i32, %c0_i32_0 : i32, i32
  }
  func.func @transform_5(%arg0: i32, %arg1: i32) -> (i32, i32) {
    %c0_i32 = arith.constant 0 : i32
    %c0_i32_0 = arith.constant 0 : i32
    %c0_i32_1 = arith.constant 0 : i32
    return %c0_i32, %c0_i32_0 : i32, i32
  }
  func.func @transform_6(%arg0: i32, %arg1: i32) -> (i32, i32) {
    %c0_i32 = arith.constant 0 : i32
    %c0_i32_0 = arith.constant 0 : i32
    %c0_i32_1 = arith.constant 0 : i32
    return %c0_i32, %c0_i32_0 : i32, i32
  }
  func.func @transform_7(%arg0: i32, %arg1: i32) -> (i32, i32) {
    %c0_i32 = arith.constant 0 : i32
    %c0_i32_0 = arith.constant 0 : i32
    %c0_i32_1 = arith.constant 0 : i32
    return %c0_i32, %c0_i32_0 : i32, i32
  }
  func.func @transform_8(%arg0: i32, %arg1: i32) -> (i32, i32) {
    %c0_i32 = arith.constant 0 : i32
    %c0_i32_0 = arith.constant 0 : i32
    return %arg0, %c0_i32 : i32, i32
  }
}

</mosaic_0001>

<bundles_post_ra>
// kernel: tpu_custom_call.1
= control target key start
LH: loop header
LB: loop body
LE: loop exit
PB: predicated region body
PF: predicated region fallthrough
CT: control target
= control target key end

     0   :  { %v673_v1 = vmov 0   ;;  %v674_v2 = vmov 0.0   ;;  %s934_s0 = inlined_call_operand.vmem [shape: f32[8,2,128], index: 0, kind: input, shape index: {}]   ;;  %s935_s1 = inlined_call_operand.vmem [shape: f32[8,1], index: 1, kind: input, shape index: {}]   ;;  %s936_s2 = inlined_call_operand.vmem [shape: f32[32,64], index: 2, kind: input, shape index: {}]   ;;  %s937_s3 = inlined_call_operand.vmem [shape: f32[1,64], index: 3, kind: input, shape index: {}]   ;;  %s938_s4 = inlined_call_operand.vmem [shape: f32[64,32], index: 4, kind: input, shape index: {}]   ;;  %s939_s5 = inlined_call_operand.vmem [shape: f32[1,32], index: 5, kind: input, shape index: {}]   ;;  %s940_s6 = inlined_call_operand.vmem [shape: f32[32,128], index: 6, kind: input, shape index: {}]   ;;  %s941_s7 = inlined_call_operand.vmem [shape: f32[1,128], index: 7, kind: input, shape index: {}]   ;;  %s942_s8 = inlined_call_operand.hbm [shape: f32[8,128], index: 8, kind: output, shape index: {}]  }
   0x1   :  { %v246_v0 = vld [vmem:[%s935_s1] sm:$0xff]  ;;  %650 = vset.pattern.permute.xlu0 %v673_v1  ;;  %36 = vst [vmem:[#allocation2 + $0x4] sm:$0x3] %v674_v2  ;;  %34 = vst [vmem:[#allocation2] sm:$0x3] %v674_v2  ;;  %602 = vmatprep.subr.mxu0 %v674_v2 }
   0x2   :  { %35 = vst [vmem:[#allocation2 + $0x2] sm:$0x3] %v674_v2  ;;  %37 = vst [vmem:[#allocation2 + $0x6] sm:$0x3] %v674_v2  ;;  %249 = vperm.xlu0 %650, %v246_v0   ;;  %613 = vmatprep.subr.mxu1 %v674_v2 }
   0x3   :  { %38 = vst [vmem:[#allocation2 + $0x8] sm:$0x3] %v674_v2  ;;  %39 = vst [vmem:[#allocation2 + $0xa] sm:$0x3] %v674_v2 }
   0x4   :  { %40 = vst [vmem:[#allocation2 + $0xc] sm:$0x3] %v674_v2  ;;  %41 = vst [vmem:[#allocation2 + $0xe] sm:$0x3] %v674_v2 }
   0x5   :  { %13 = vsyncpa [#allocation4], 0  ;;  %v52_v3 = vld [vmem:[%s934_s0 + $0x4] sm:$0x3]  ;;  %v51_v4 = vld [vmem:[%s934_s0 + $0x2] sm:$0x3] }
   0x6   :  { %v53_v5 = vld [vmem:[%s934_s0 + $0x6] sm:$0x3]  ;;  %v50_v6 = vld [vmem:[%s934_s0] sm:$0x3]  ;;  %v54_v7 = vld [vmem:[%s934_s0 + $0x8] sm:$0x3] }
   0x7   :  { %v55_v8 = vld [vmem:[%s934_s0 + $0xa] sm:$0x3]  ;;  %v56_v9 = vld [vmem:[%s934_s0 + $0xc] sm:$0x3]  ;;  %v57_v10 = vld [vmem:[%s934_s0 + $0xe] sm:$0x3] }
   0x8   :  { %v44_v11 = vld [vmem:[#allocation2 + $0x4] sm:$0x3]  ;;  %v42_v17 = vld [vmem:[#allocation2] sm:$0x3]  ;;  %vm85_vm0 = vcmask 1041408   ;;  %s675_s0 = smov 96  }
   0x9   :  { %v43_v12 = vld [vmem:[#allocation2 + $0x2] sm:$0x3]  ;;  %v45_v13 = vld [vmem:[#allocation2 + $0x6] sm:$0x3]  ;;  %v60_v14 = vadd.f32 %v52_v3, %v44_v11  ;;  %v58_v20 = vadd.f32 %v50_v6, %v42_v17  ;;  %s676_s22 = smov 64   ;;  %s677_s23 = smov 32  }
   0xa   :  { %v59_v15 = vadd.f32 %v51_v4, %v43_v12  ;;  %v61_v16 = vadd.f32 %v53_v5, %v45_v13  ;;  %v46_v18 = vld [vmem:[#allocation2 + $0x8] sm:$0x3]  ;;  %v47_v19 = vld [vmem:[#allocation2 + $0xa] sm:$0x3]  ;;  %vm678_vm1 = vmmov 0   ;;  %vm294_vm2 = vcmask 1041409  }
   0xb   :  { %v62_v21 = vadd.f32 %v54_v7, %v46_v18  ;;  %v63_v22 = vadd.f32 %v55_v8, %v47_v19  ;;  %v48_v23 = vld [vmem:[#allocation2 + $0xc] sm:$0x3]  ;;  %v49_v24 = vld [vmem:[#allocation2 + $0xe] sm:$0x3]  ;;  %68 = vst [vmem:[#allocation2 + $0x4] sm:$0x3] %v60_v14  ;;  %610 = vmatprep.mubr.msk.f32.mxu0 %vm678_vm1, %v674_v2  ;;  %629 = vmatprep.mubr.msk.f32.mxu1 %vm678_vm1, %v674_v2 }
   0xc   :  { %67 = vst [vmem:[#allocation2 + $0x2] sm:$0x3] %v59_v15  ;;  %69 = vst [vmem:[#allocation2 + $0x6] sm:$0x3] %v61_v16  ;;  %v64_v25 = vadd.f32 %v56_v9, %v48_v23  ;;  %v65_v26 = vadd.f32 %v57_v10, %v49_v24  ;;  %vm297_vm3 = vcmask 1042434   ;;  %vm300_vm4 = vcmask 1043459  }
   0xd   :  { %66 = vst [vmem:[#allocation2] sm:$0x3] %v58_v20  ;;  %70 = vst [vmem:[#allocation2 + $0x8] sm:$0x3] %v62_v21  ;;  %vm303_vm5 = vcmask 1044484   ;;  %vm306_vm6 = vcmask 1045509  }
   0xe   :  { %71 = vst [vmem:[#allocation2 + $0xa] sm:$0x3] %v63_v22  ;;  %72 = vst [vmem:[#allocation2 + $0xc] sm:$0x3] %v64_v25  ;;  %vm309_vm7 = vcmask 1046534   ;;  %vm312_vm8 = vcmask 1047559  }
   0xf   :  { %73 = vst [vmem:[#allocation2 + $0xe] sm:$0x3] %v65_v26  ;;  %vm314_vm9 = vcmask 261120   ;;  %vm403_vm10 = vcmask 523264   ;;  %s679_s12 = smov [#allocation3]  }
  0x12   :  { %v79_v27 = vld [vmem:[#allocation2 + $0x4] sm:$0x3] }
  0x13   :  { %v78_v28 = vld [vmem:[#allocation2 + $0x2] sm:$0x3]  ;;  %v80_v29 = vld [vmem:[#allocation2 + $0x6] sm:$0x3]  ;;  %v100_v30 = vsel %vm85_vm0, %v79_v27, 0.0 }
  0x14   :  { %v93_v31 = vsel %vm85_vm0, %v78_v28, 0.0  ;;  %v107_v32 = vsel %vm85_vm0, %v80_v29, 0.0  ;;  %v77_v33 = vld [vmem:[#allocation2] sm:$0x3]  ;;  %v101_v34 = vrot.slane %v100_v30, 4  ;;  %v277_v28 = vld [vmem:[%s936_s2 + $0x18] sm:$0xff] }
  0x15   :  { %v94_v35 = vrot.slane %v93_v31, 4  ;;  %v108_v36 = vrot.slane %v107_v32, 4  ;;  %v86_v37 = vsel %vm85_vm0, %v77_v33, 0.0  ;;  %v81_v38 = vld [vmem:[#allocation2 + $0x8] sm:$0x3]  ;;  %603 = vmatpush3.msra.mxu0 %v277_v28  ;;  %v276_v29 = vld [vmem:[%s936_s2 + $0x10] sm:$0xff] }
  0x16   :  { %v87_v39 = vrot.slane %v86_v37, 4  ;;  %v114_v40 = vsel %vm85_vm0, %v81_v38, 0.0  ;;  %v82_v41 = vld [vmem:[#allocation2 + $0xa] sm:$0x3]  ;;  %v83_v42 = vld [vmem:[#allocation2 + $0xc] sm:$0x3]  ;;  %v102_v43 = vadd.f32 %v101_v34, %v100_v30  ;;  %604 = vmatprep.subr.mxu0 %v674_v2 }
  0x17   :  { %v95_v44 = vadd.f32 %v94_v35, %v93_v31  ;;  %v109_v45 = vadd.f32 %v108_v36, %v107_v32  ;;  %v115_v46 = vrot.slane %v114_v40, 4  ;;  %v121_v48 = vsel %vm85_vm0, %v82_v41, 0.0  ;;  %v84_v8 = vld [vmem:[#allocation2 + $0xe] sm:$0x3]  ;;  %605 = vmatpush3.msra.mxu0 %v276_v29  ;;  %v274_v31 = vld [vmem:[%s936_s2] sm:$0xff]  ;;  %v395_v32 = vld [vmem:[%s938_s4 + $0x38] sm:$0xff] }
  0x18   :  { %v88_v47 = vadd.f32 %v87_v39, %v86_v37  ;;  %v128_v49 = vsel %vm85_vm0, %v83_v42, 0.0  ;;  %v103_v50 = vrot.slane %v102_v43, 2  ;;  %v122_v55 = vrot.slane %v121_v48, 4  ;;  %v275_v30 = vld [vmem:[%s936_s2 + $0x8] sm:$0xff]  ;;  %606 = vmatprep.subr.mxu0 %v674_v2  ;;  %v394_v33 = vld [vmem:[%s938_s4 + $0x30] sm:$0xff]  ;;  %614 = vmatpush3.msra.mxu1 %v395_v32  ;;  %v392_v35 = vld [vmem:[%s938_s4 + $0x20] sm:$0xff] }
  0x19   :  { %v96_v51 = vrot.slane %v95_v44, 2  ;;  %v110_v52 = vrot.slane %v109_v45, 2  ;;  %v116_v53 = vadd.f32 %v115_v46, %v114_v40  ;;  %v129_v62 = vrot.slane %v128_v49, 4  ;;  %607 = vmatpush3.msra.mxu0 %v275_v30  ;;  %615 = vmatprep.subr.mxu1 %v674_v2  ;;  %v393_v34 = vld [vmem:[%s938_s4 + $0x28] sm:$0xff]  ;;  %v391_v36 = vld [vmem:[%s938_s4 + $0x18] sm:$0xff]  ;;  %s569_s2 = sshll.u32 %s679_s12, 4  ;;  %s570_s2 = int_to_ptr.vmem [resolvable:$true] %s569_s2 }
  0x1a   :  { %v89_v54 = vrot.slane %v88_v47, 2  ;;  %v104_v56 = vadd.f32 %v103_v50, %v102_v43  ;;  %v123_v61 = vadd.f32 %v122_v55, %v121_v48  ;;  %v135_v14 = vsel %vm85_vm0, %v84_v8, 0.0  ;;  %608 = vmatprep.subr.mxu0 %v674_v2  ;;  %616 = vmatpush3.msra.mxu1 %v394_v33  ;;  %p656_p1 = scmp.lt.s32.totalorder %s570_s2, %s570_s2 }
  0x1b   :  { %v97_v57 = vadd.f32 %v96_v51, %v95_v44  ;;  %v111_v58 = vadd.f32 %v110_v52, %v109_v45  ;;  %v117_v59 = vrot.slane %v116_v53, 2  ;;  %v130_v9 = vadd.f32 %v129_v62, %v128_v49  ;;  %609 = vmatpush3.msra.mxu0 %v274_v31  ;;  %617 = vmatprep.subr.mxu1 %v674_v2 }
  0x1c   :  { %v90_v60 = vadd.f32 %v89_v54, %v88_v47  ;;  %v105_v63 = vrot.slane %v104_v56, 1  ;;  %v124_v5 = vrot.slane %v123_v61, 2  ;;  %v136_v18 = vrot.slane %v135_v14, 4  ;;  %632 = vmatprep.subr.mxu0 %v674_v2  ;;  %618 = vmatpush3.msra.mxu1 %v393_v34 }
  0x1d   :  { %v98_v0 = vrot.slane %v97_v57, 1  ;;  %v112_v1 = vrot.slane %v111_v58, 1  ;;  %v118_v3 = vadd.f32 %v117_v59, %v116_v53  ;;  %v131_v17 = vrot.slane %v130_v9, 2  ;;  %619 = vmatprep.subr.mxu1 %v674_v2 }
  0x1e   :  { %v91_v4 = vrot.slane %v90_v60, 1  ;;  %v769_v6 = vadd.f32 %v105_v63, %v104_v56  ;;  %v125_v13 = vadd.f32 %v124_v5, %v123_v61  ;;  %v137_v21 = vadd.f32 %v136_v18, %v135_v14  ;;  %620 = vmatpush3.msra.mxu1 %v392_v35 }
  0x1f   :  { %v771_v7 = vadd.f32 %v98_v0, %v97_v57  ;;  %v777_v10 = vadd.f32 %v112_v1, %v111_v58  ;;  %v119_v12 = vrot.slane %v118_v3, 1  ;;  %v132_v20 = vadd.f32 %v131_v17, %v130_v9  ;;  %621 = vmatprep.subr.mxu1 %v674_v2 }
  0x20   :  { %154 = vrot.lane.b32.xlu1 %v769_v6, %s675_s0  ;;  %v779_v11 = vadd.f32 %v91_v4, %v90_v60  ;;  %v126_v16 = vrot.slane %v125_v13, 1  ;;  %v138_v23 = vrot.slane %v137_v21, 2  ;;  %622 = vmatpush3.msra.mxu1 %v391_v36 }
  0x21   :  { %152 = vrot.lane.b32.xlu0 %v771_v7, %s675_s0  ;;  %v786_v15 = vadd.f32 %v119_v12, %v118_v3  ;;  %v133_v22 = vrot.slane %v132_v20, 1  ;;  %623 = vmatprep.subr.mxu1 %v674_v2 }
  0x22   :  { %v792_v19 = vadd.f32 %v126_v16, %v125_v13  ;;  %v139_v25 = vadd.f32 %v138_v23, %v137_v21 }
  0x23   :  { %v802_v24 = vadd.f32 %v133_v22, %v132_v20 }
  0x24   :  { %150 = vrot.lane.b32.xlu1 %v779_v11, %s675_s0  ;;  %v140_v26 = vrot.slane %v139_v25, 1 }
  0x25   :  { %156 = vrot.lane.b32.xlu0 %v777_v10, %s675_s0 }
  0x26   :  { %v812_v27 = vadd.f32 %v140_v26, %v139_v25 }
  0x28   :  { %184 = vrot.lane.b32.xlu1 %v771_v7, %s676_s22 }
  0x29   :  { %158 = vrot.lane.b32.xlu0 %v786_v15, %s675_s0 }
  0x2c   :  { %186 = vrot.lane.b32.xlu1 %v769_v6, %s676_s22 }
  0x2d   :  { %160 = vrot.lane.b32.xlu0 %v792_v19, %s675_s0 }
  0x30   :  { %182 = vrot.lane.b32.xlu1 %v779_v11, %s676_s22 }
  0x31   :  { %188 = vrot.lane.b32.xlu0 %v777_v10, %s676_s22 }
  0x34   :  { %216 = vrot.lane.b32.xlu1 %v771_v7, %s677_s23 }
  0x35   :  { %162 = vrot.lane.b32.xlu0 %v802_v24, %s675_s0 }
  0x38   :  { %190 = vrot.lane.b32.xlu1 %v786_v15, %s676_s22 }
  0x39   :  { %218 = vrot.lane.b32.xlu0 %v769_v6, %s677_s23 }
  0x3c   :  { %164 = vrot.lane.b32.xlu1 %v812_v27, %s675_s0 }
  0x3d   :  { %192 = vrot.lane.b32.xlu0 %v792_v19, %s676_s22 }
  0x40   :  { %214 = vrot.lane.b32.xlu1 %v779_v11, %s677_s23 }
  0x41   :  { %220 = vrot.lane.b32.xlu0 %v777_v10, %s677_s23 }
  0x44   :  { %194 = vrot.lane.b32.xlu1 %v802_v24, %s676_s22 }
  0x45   :  { %222 = vrot.lane.b32.xlu0 %v786_v15, %s677_s23 }
  0x48   :  { %196 = vrot.lane.b32.xlu1 %v812_v27, %s676_s22 }
  0x49   :  { %224 = vrot.lane.b32.xlu0 %v792_v19, %s677_s23 }
  0x4c   :  { %226 = vrot.lane.b32.xlu1 %v802_v24, %s677_s23 }
  0x4d   :  { %228 = vrot.lane.b32.xlu0 %v812_v27, %s677_s23 }
  0x7d   :  { %v874_v37 = vpop.permute.xlu0 %249 }
  0x7e   :  { %v251_v3 = vrot.slane %v874_v37, 1  ;;  %v253_v14 = vrot.slane %v874_v37, 3  ;;  %v254_v18 = vrot.slane %v874_v37, 4  ;;  %v255_v22 = vrot.slane %v874_v37, 5 }
  0x7f   :  { %v257_v36 = vrot.slane %v874_v37, 7 }
  0x92   :  { %v155_v38 = vpop.permute.xlu1 %154 }
  0x93   :  { %v153_v39 = vpop.permute.xlu0 %152  ;;  %v176_v57 = vadd.f32 %v155_v38, %v769_v6 }
  0x94   :  { %v175_v52 = vadd.f32 %v153_v39, %v771_v7  ;;  %v256_v39 = vrot.slane %v874_v37, 6 }
  0x96   :  { %v151_v41 = vpop.permute.xlu1 %150 }
  0x97   :  { %v157_v40 = vpop.permute.xlu0 %156  ;;  %v174_v55 = vadd.f32 %v151_v41, %v779_v11 }
  0x98   :  { %v177_v58 = vadd.f32 %v157_v40, %v777_v10  ;;  %v252_v10 = vrot.slane %v874_v37, 2 }
  0x9a   :  { %v185_v43 = vpop.permute.xlu1 %184 }
  0x9b   :  { %v159_v42 = vpop.permute.xlu0 %158  ;;  %v207_v56 = vadd.f32 %v185_v43, %v175_v52  ;;  %v390_v52 = vld [vmem:[%s938_s4 + $0x10] sm:$0xff] }
  0x9c   :  { %v178_v63 = vadd.f32 %v159_v42, %v786_v15  ;;  %624 = vmatpush3.msra.mxu1 %v390_v52 }
  0x9d   :  { %625 = vmatprep.subr.mxu1 %v674_v2 }
  0x9e   :  { %v187_v45 = vpop.permute.xlu1 %186 }
  0x9f   :  { %v161_v44 = vpop.permute.xlu0 %160  ;;  %v208_v0 = vadd.f32 %v187_v45, %v176_v57 }
  0xa0   :  { %v179_v6 = vadd.f32 %v161_v44, %v792_v19 }
  0xa2   :  { %v183_v47 = vpop.permute.xlu1 %182 }
  0xa3   :  { %v189_v46 = vpop.permute.xlu0 %188  ;;  %v206_v59 = vadd.f32 %v183_v47, %v174_v55  ;;  %v481_v55 = vld [vmem:[%s940_s6 + $0x18] sm:$0xff] }
  0xa4   :  { %v209_v1 = vadd.f32 %v189_v46, %v177_v58 }
  0xa6   :  { %v217_v49 = vpop.permute.xlu1 %216 }
  0xa7   :  { %v163_v48 = vpop.permute.xlu0 %162  ;;  %v239_v60 = vadd.f32 %v217_v49, %v207_v56  ;;  %v577_v56 = vld [vmem:[%s937_s3] ss:$0 sm:$0xff] }
  0xa8   :  { %v180_v19 = vadd.f32 %v163_v48, %v802_v24 }
  0xa9   :  { %v267_v8 = vmul.f32 %v251_v3, %v239_v60 }
  0xaa   :  { %v191_v51 = vpop.permute.xlu1 %190 }
  0xab   :  { %v219_v50 = vpop.permute.xlu0 %218  ;;  %v210_v7 = vadd.f32 %v191_v51, %v178_v63  ;;  %v293_v20 = vrot.slane %v267_v8, 7  ;;  %v478_v63 = vld [vmem:[%s940_s6] sm:$0xff] }
  0xac   :  { %v240_v5 = vadd.f32 %v219_v50, %v208_v0  ;;  %v579_v0 = vld [vmem:[%s939_s5] ss:$0 sm:$0xff] }
  0xae   :  { %v165_v54 = vpop.permute.xlu1 %164  ;;  %v268_v16 = vmul.f32 %v252_v10, %v240_v5 }
  0xaf   :  { %v193_v53 = vpop.permute.xlu0 %192  ;;  %v181_v26 = vadd.f32 %v165_v54, %v812_v27  ;;  %v388_v54 = vld [vmem:[%s938_s4] sm:$0xff] }
  0xb0   :  { %v211_v17 = vadd.f32 %v193_v53, %v179_v6  ;;  %v296_v31 = vrot.slane %v268_v16, 6  ;;  %v389_v53 = vld [vmem:[%s938_s4 + $0x8] sm:$0xff] }
  0xb1   :  { %626 = vmatpush3.msra.mxu1 %v389_v53 }
  0xb2   :  { %v215_v62 = vpop.permute.xlu1 %214  ;;  %627 = vmatprep.subr.mxu1 %v674_v2 }
  0xb3   :  { %v221_v61 = vpop.permute.xlu0 %220  ;;  %v238_v4 = vadd.f32 %v215_v62, %v206_v59  ;;  %628 = vmatpush3.msra.mxu1 %v388_v54  ;;  %v479_v62 = vld [vmem:[%s940_s6 + $0x8] sm:$0xff] }
  0xb4   :  { %v241_v9 = vadd.f32 %v221_v61, %v209_v1  ;;  %v480_v61 = vld [vmem:[%s940_s6 + $0x10] sm:$0xff]  ;;  %s651_s6 = scalar_lea.vmem %s570_s2, 128 }
  0xb5   :  { %v266_v15 = vmul.f32 %v874_v37, %v238_v4  ;;  %p652_p0 = scmp.ne.s32.totalorder %s570_s2, %s651_s6  ;;  %p657_p2 = scmp.lt.s32.totalorder %s651_s6, %s651_s6 }
  0xb6   :  { %v195_v12 = vpop.permute.xlu1 %194  ;;  %v269_v21 = vmul.f32 %v253_v14, %v241_v9 }
  0xb7   :  { %v223_v11 = vpop.permute.xlu0 %222  ;;  %v295_v30 = vsel %vm294_vm2, %v293_v20, %v266_v15  ;;  %v212_v32 = vadd.f32 %v195_v12, %v180_v19  ;;  %p658_p3 = por %p657_p2, %p656_p1 }
  0xb8   :  { %v242_v13 = vadd.f32 %v223_v11, %v210_v7  ;;  %v299_v35 = vrot.slane %v269_v21, 5  ;;  %v298_v41 = vsel %vm297_vm3, %v296_v31, %v295_v30  ;;  %v581_v7 = vld [vmem:[%s941_s7] ss:$0 sm:$0xff] }
  0xb9   :  { %p659_p4 = pnand %p658_p3, %p652_p0 }
  0xba   :  { %v197_v25 = vpop.permute.xlu1 %196  ;;  %v270_v28 = vmul.f32 %v254_v18, %v242_v13  ;;  %v301_v46 = vsel %vm300_vm4, %v299_v35, %v298_v41 }
  0xbb   :  { %v225_v23 = vpop.permute.xlu0 %224  ;;  %v213_v34 = vadd.f32 %v197_v25, %v181_v26 }
  0xbc   :  { %v243_v29 = vadd.f32 %v225_v23, %v211_v17  ;;  %v302_v24 = vrot.slane %v270_v28, 4 }
  0xbe   :  { %v271_v33 = vmul.f32 %v255_v22, %v243_v29  ;;  %v227_v40 = vpop.permute.xlu1 %226  ;;  %v304_v47 = vsel %vm303_vm5, %v302_v24, %v301_v46 }
  0xbf   :  { %v229_v38 = vpop.permute.xlu0 %228  ;;  %v244_v27 = vadd.f32 %v227_v40, %v212_v32 }
  0xc0   :  { %v245_v42 = vadd.f32 %v229_v38, %v213_v34  ;;  %v305_v43 = vrot.slane %v271_v33, 3 }
  0xc1   :  { %v272_v45 = vmul.f32 %v256_v39, %v244_v27 }
  0xc2   :  { %v273_v44 = vmul.f32 %v257_v36, %v245_v42  ;;  %v307_v50 = vsel %vm306_vm6, %v305_v43, %v304_v47 }
  0xc3   :  { %v308_v49 = vrot.slane %v272_v45, 2 }
  0xc4   :  { %v311_v48 = vrot.slane %v273_v44, 1 }
  0xc5   :  { %v310_v51 = vsel %vm309_vm7, %v308_v49, %v307_v50 }
  0xc6   :  { %v313_v37 = vsel %vm312_vm8, %v311_v48, %v310_v51 }
  0xc7   :  { %611 = vmatmul.mubr.msk.f32.vlgmr.msra.gmra.mxu0 %vm314_vm9, %v313_v37 }
  0xc8   :  { %640 = vmatprep.mubr.msk.f32.mxu0 %vm678_vm1, %v674_v2  ;;  %633 = vmatpush3.msra.mxu0 %v481_v55 }
  0xc9   :  { %634 = vmatprep.subr.mxu0 %v674_v2 }
  0xca   :  { %635 = vmatpush3.msra.mxu0 %v480_v61 }
  0xcb   :  { %636 = vmatprep.subr.mxu0 %v674_v2 }
  0xcc   :  { %637 = vmatpush3.msra.mxu0 %v479_v62 }
  0xcd   :  { %638 = vmatprep.subr.mxu0 %v674_v2 }
  0xce   :  { %639 = vmatpush3.msra.mxu0 %v478_v63 }
 0x187   :  { %v383_v57 = vpop.f32.mrf.mxu0 }
 0x188   :  { %v384_v58 = vadd.f32 %v577_v56, %v383_v57 }
 0x189   :  { %v612_v59 = vpop.f32.mrf.mxu0 }
 0x18a   :  { %v387_v60 = vmax.f32 %v384_v58, 0.0 }
 0x18c   :  { %630 = vmatmul.mubr.msk.f32.vlgmr.msra.gmra.mxu1 %vm403_vm10, %v387_v60 }
 0x24c   :  { %v473_v1 = vpop.f32.mrf.mxu1 }
 0x24d   :  { %v474_v3 = vadd.f32 %v579_v0, %v473_v1 }
 0x24e   :  { %v631_v4 = vpop.f32.mrf.mxu1 }
 0x24f   :  { %v477_v5 = vmax.f32 %v474_v3, 0.0 }
 0x251   :  { %641 = vmatmul.mubr.msk.f32.vlgmr.msra.gmra.mxu0 %vm314_vm9, %v477_v5 }
 0x311   :  { %v558_v2 = vpop.f32.mrf.mxu0 }
 0x312   :  { %v559_v8 = vadd.f32 %v581_v7, %v558_v2 }
 0x313   :  { %v642_v9 = vpop.f32.mrf.mxu0 }
 0x314   :  { %562 = vst [vmem:[#allocation3] sm:$0xff] %v559_v8 }
 0x315   :  { %662 = shalt.err (!%p659_p4)
}
 0x316   :  { %572 = dma.vmem_to_hbm [thread:$0]  %s570_s2, 128, %s942_s8, [#allocation4]  }
 0x317   :  { %671 = dma.done.wait [#allocation4], 128  }
 0x318   :  { %672 = vsyncadd [#allocation4], 4294967168 }
 0x319   :  { %576 = vsyncpa [#allocation4], 1 }

</bundles_post_ra>
